<compile_context>
chip_gen: v5e
topology: v5e:2x2
jax: 0.10.0
libtpu: 0.0.40
codegen_flags: <defaults>
</compile_context>

<pallas_src>
import jax
import jax.numpy as jnp
from jax.experimental import pallas as pl
from jax.experimental.pallas import tpu as pltpu


def _round_up(x: int, m: int) -> int:
    return ((x + m - 1) // m) * m


# ---------------------------------------------------------------------------
# Kernel 1: per-edge MLP (tiled over E; weights resident via constant index_map)
# ---------------------------------------------------------------------------
def _edge_mlp_kernel(x_ref, w0_ref, b0_ref, w1_ref, b1_ref, out_ref):
    # x_ref: [tE, input_dim], w0: [input_dim, hidden], b0: [1, hidden]
    # w1: [hidden, out_dim], b1: [1, out_dim], out_ref: [tE, out_dim]
    h = jnp.tanh(
        jnp.dot(x_ref[...], w0_ref[...], preferred_element_type=jnp.float32)
        + b0_ref[...]
    )
    out_ref[...] = jnp.tanh(
        jnp.dot(h, w1_ref[...], preferred_element_type=jnp.float32) + b1_ref[...]
    ).astype(out_ref.dtype)


# ---------------------------------------------------------------------------
# Kernel 2: new_state = agg_matrix @ edge_states (N x E grid, E reduction)
# ---------------------------------------------------------------------------
def _aggregate_kernel(agg_ref, e_ref, out_ref, acc_ref):
    # agg_ref: [tN, tE], e_ref: [tE, out_dim], out_ref: [tN, out_dim]
    k = pl.program_id(1)

    @pl.when(k == 0)
    def _():
        acc_ref[...] = jnp.zeros_like(acc_ref)

    acc_ref[...] += jnp.dot(
        agg_ref[...], e_ref[...], preferred_element_type=jnp.float32
    )

    @pl.when(k == pl.num_programs(1) - 1)
    def _():
        out_ref[...] = acc_ref[...].astype(out_ref.dtype)


# ---------------------------------------------------------------------------
# Wrapper: same forward semantics as the PyTorch StateTransition module.
# ---------------------------------------------------------------------------
def state_transition_pallas(
    params, node_states, node_labels, edges, agg_matrix, l, *, tile_n=512, tile_e=512
):
    src = edges[:, 0]
    tgt = edges[:, 1]

    if l == 0:
        edge_input = jnp.concatenate(
            [node_labels[src], node_labels[tgt], node_states[tgt]], axis=-1
        )
    else:
        edge_input = jnp.concatenate(
            [node_states[tgt], node_labels[src], node_labels[tgt]], axis=-1
        )

    edge_input = edge_input.astype(jnp.float32)
    agg = agg_matrix.astype(jnp.float32)

    E, in_dim = edge_input.shape
    N = agg.shape[0]
    hid = params["W0"].shape[1]
    out_dim = params["W1"].shape[1]

    # --- tile sizes (lane/sublane aligned) and padding to tile multiples ---
    tE = min(tile_e, _round_up(E, 128))   # multiple of 128 (lane dim of agg tile)
    E_pad = _round_up(E, tE)
    tN = min(tile_n, _round_up(N, 8))     # multiple of 8 (sublane dim)
    N_pad = _round_up(N, tN)

    if E_pad != E:
        edge_input = jnp.pad(edge_input, ((0, E_pad - E), (0, 0)))
    if E_pad != E or N_pad != N:
        agg = jnp.pad(agg, ((0, N_pad - N), (0, E_pad - E)))

    # ---------------- kernel 1: edge MLP ----------------
    edge_states = pl.pallas_call(
        _edge_mlp_kernel,
        out_shape=jax.ShapeDtypeStruct((E_pad, out_dim), jnp.float32),
        grid_spec=pltpu.PrefetchScalarGridSpec(
            num_scalar_prefetch=0,
            grid=(E_pad // tE,),
            in_specs=[
                pl.BlockSpec((tE, in_dim), lambda e: (e, 0)),
                pl.BlockSpec((in_dim, hid), lambda e: (0, 0)),   # resident weights
                pl.BlockSpec((1, hid), lambda e: (0, 0)),
                pl.BlockSpec((hid, out_dim), lambda e: (0, 0)),
                pl.BlockSpec((1, out_dim), lambda e: (0, 0)),
            ],
            out_specs=pl.BlockSpec((tE, out_dim), lambda e: (e, 0)),
        ),
        compiler_params=pltpu.CompilerParams(dimension_semantics=("parallel",)),
    )(edge_input, params["W0"], params["b0"], params["W1"], params["b1"])

    # ---------------- kernel 2: aggregation matmul ----------------
    out = pl.pallas_call(
        _aggregate_kernel,
        out_shape=jax.ShapeDtypeStruct((N_pad, out_dim), jnp.float32),
        grid_spec=pltpu.PrefetchScalarGridSpec(
            num_scalar_prefetch=0,
            grid=(N_pad // tN, E_pad // tE),
            in_specs=[
                pl.BlockSpec((tN, tE), lambda i, k: (i, k)),
                pl.BlockSpec((tE, out_dim), lambda i, k: (k, 0)),
            ],
            out_specs=pl.BlockSpec((tN, out_dim), lambda i, k: (i, 0)),
            scratch_shapes=[pltpu.VMEM((tN, out_dim), jnp.float32)],
        ),
        compiler_params=pltpu.CompilerParams(
            dimension_semantics=("parallel", "arbitrary")
        ),
    )(agg, edge_states)

    return out[:N]


# ---------------------------------------------------------------------------
# Deterministic parameter init (MLP: input_dim -> hidden -> output_dim, tanh both)
# ---------------------------------------------------------------------------
def init_params(key, input_dim, hidden_dim, output_dim):
    k0, k1 = jax.random.split(key)

    def xavier(k, fan_in, fan_out):
        std = (2.0 / (fan_in + fan_out)) ** 0.5
        return std * jax.random.normal(k, (fan_in, fan_out), dtype=jnp.float32)

    return {
        "W0": xavier(k0, input_dim, hidden_dim),
        "b0": jnp.zeros((1, hidden_dim), jnp.float32),
        "W1": xavier(k1, hidden_dim, output_dim),
        "b1": jnp.zeros((1, output_dim), jnp.float32),
    }


def _reference(params, node_states, node_labels, edges, agg_matrix, l):
    src, tgt = edges[:, 0], edges[:, 1]
    if l == 0:
        x = jnp.concatenate(
            [node_labels[src], node_labels[tgt], node_states[tgt]], -1
        )
    else:
        x = jnp.concatenate(
            [node_states[tgt], node_labels[src], node_labels[tgt]], -1
        )
    h = jnp.tanh(x @ params["W0"] + params["b0"])
    e = jnp.tanh(h @ params["W1"] + params["b1"])
    return agg_matrix @ e


if __name__ == "__main__":
    key = jax.random.PRNGKey(0)

    label_dim = 4
    state_dim = 8
    hidden_dim = 32
    input_dim = 2 * label_dim + state_dim  # 16 (matches both concat branches)
    output_dim = state_dim

    k_params, k_rest = jax.random.split(key)
    params = init_params(k_params, input_dim, hidden_dim, output_dim)

    def make_graph(k, N, E):
        ks, kl, ke, ka = jax.random.split(k, 4)
        node_states = jax.random.normal(ks, (N, state_dim), dtype=jnp.float32)
        node_labels = jax.random.normal(kl, (N, label_dim), dtype=jnp.float32)
        edges = jax.random.randint(ke, (E, 2), 0, N, dtype=jnp.int32)
        agg_matrix = jax.random.uniform(ka, (N, E), dtype=jnp.float32)
        return node_states, node_labels, edges, agg_matrix

    k_small, k_big = jax.random.split(k_rest)

    # Small graph (single-tile path), run both l-branches.
    ns, nl, ed, am = make_graph(k_small, N=8, E=16)
    out0 = state_transition_pallas(params, ns, nl, ed, am, l=0)
    out1 = state_transition_pallas(params, ns, nl, ed, am, l=1)
    jax.block_until_ready(out0)
    jax.block_until_ready(out1)
    assert jnp.allclose(out0, _reference(params, ns, nl, ed, am, 0), atol=1e-4)
    assert jnp.allclose(out1, _reference(params, ns, nl, ed, am, 1), atol=1e-4)

    # Slightly larger graph to exercise the tiled E-reduction (grid > 1).
    ns2, nl2, ed2, am2 = make_graph(k_big, N=20, E=1000)
    out2 = state_transition_pallas(
        params, ns2, nl2, ed2, am2, l=0, tile_n=512, tile_e=512
    )
    jax.block_until_ready(out2)
    assert jnp.allclose(
        out2, _reference(params, ns2, nl2, ed2, am2, 0), atol=1e-4, rtol=1e-4
    )

    print("KERNEL_OK")
</pallas_src>

<mosaic_0001>
module attributes {stable_mosaic.version = 11 : i64} {
  func.func @_edge_mlp_kernel(%arg0: i32, %arg1: memref<128x16xf32, #tpu.memory_space<vmem>>, %arg2: memref<16x32xf32, #tpu.memory_space<vmem>>, %arg3: memref<1x32xf32, #tpu.memory_space<vmem>>, %arg4: memref<32x8xf32, #tpu.memory_space<vmem>>, %arg5: memref<1x8xf32, #tpu.memory_space<vmem>>, %arg6: memref<128x8xf32, #tpu.memory_space<vmem>>) attributes {dimension_semantics = [#tpu.dimension_semantics<parallel>], iteration_bounds = array<i64: 1>, scalar_prefetch = 0 : i64, scratch_operands = 0 : i64, tpu.core_type = #tpu.core_type<tc>, window_params = [{transform_indices = @transform_0, window_bounds = array<i64: 128, 16>}, {pipeline_mode = #tpu.pipeline_mode<synchronous>, transform_indices = @transform_1, window_bounds = array<i64: 16, 32>}, {pipeline_mode = #tpu.pipeline_mode<synchronous>, transform_indices = @transform_2, window_bounds = array<i64: 1, 32>}, {pipeline_mode = #tpu.pipeline_mode<synchronous>, transform_indices = @transform_3, window_bounds = array<i64: 32, 8>}, {pipeline_mode = #tpu.pipeline_mode<synchronous>, transform_indices = @transform_4, window_bounds = array<i64: 1, 8>}, {transform_indices = @transform_5, window_bounds = array<i64: 128, 8>}]} {
    %c0 = arith.constant 0 : index
    %c0_0 = arith.constant 0 : index
    %0 = vector.load %arg1[%c0, %c0_0] : memref<128x16xf32, #tpu.memory_space<vmem>>, vector<128x16xf32>
    %c0_1 = arith.constant 0 : index
    %c0_2 = arith.constant 0 : index
    %1 = vector.load %arg2[%c0_1, %c0_2] : memref<16x32xf32, #tpu.memory_space<vmem>>, vector<16x32xf32>
    %cst = arith.constant dense<0.000000e+00> : vector<128x32xf32>
    %2 = tpu.matmul %0, %1, %cst {dimension_numbers = #tpu.dot_dimension_numbers<[1], [0], [0], [1], [0, 0, 1, 1], [], []>} : vector<128x16xf32>, vector<16x32xf32>, vector<128x32xf32> -> vector<128x32xf32>
    %c0_3 = arith.constant 0 : index
    %c0_4 = arith.constant 0 : index
    %3 = vector.load %arg3[%c0_3, %c0_4] : memref<1x32xf32, #tpu.memory_space<vmem>>, vector<1x32xf32>
    %4 = vector.broadcast %3 : vector<1x32xf32> to vector<128x32xf32>
    %5 = arith.addf %2, %4 : vector<128x32xf32>
    %6 = math.tanh %5 : vector<128x32xf32>
    %c0_5 = arith.constant 0 : index
    %c0_6 = arith.constant 0 : index
    %7 = vector.load %arg4[%c0_5, %c0_6] : memref<32x8xf32, #tpu.memory_space<vmem>>, vector<32x8xf32>
    %cst_7 = arith.constant dense<0.000000e+00> : vector<128x8xf32>
    %8 = tpu.matmul %6, %7, %cst_7 {dimension_numbers = #tpu.dot_dimension_numbers<[1], [0], [0], [1], [0, 0, 1, 1], [], []>} : vector<128x32xf32>, vector<32x8xf32>, vector<128x8xf32> -> vector<128x8xf32>
    %c0_8 = arith.constant 0 : index
    %c0_9 = arith.constant 0 : index
    %9 = vector.load %arg5[%c0_8, %c0_9] : memref<1x8xf32, #tpu.memory_space<vmem>>, vector<1x8xf32>
    %10 = vector.broadcast %9 : vector<1x8xf32> to vector<128x8xf32>
    %11 = arith.addf %8, %10 : vector<128x8xf32>
    %12 = math.tanh %11 : vector<128x8xf32>
    %c0_10 = arith.constant 0 : index
    %c0_11 = arith.constant 0 : index
    %13 = vector.load %arg6[%c0_10, %c0_11] : memref<128x8xf32, #tpu.memory_space<vmem>>, vector<128x8xf32>
    tpu.vector_store %arg6[%c0_10, %c0_11], %12 {strides = array<i32>} : memref<128x8xf32, #tpu.memory_space<vmem>>, vector<128x8xf32>,
    return
  }
  func.func @transform_0(%arg0: i32) -> (i32, i32) {
    %c0_i32 = arith.constant 0 : i32
    %c0_i32_0 = arith.constant 0 : i32
    return %arg0, %c0_i32 : i32, i32
  }
  func.func @transform_1(%arg0: i32) -> (i32, i32) {
    %c0_i32 = arith.constant 0 : i32
    %c0_i32_0 = arith.constant 0 : i32
    %c0_i32_1 = arith.constant 0 : i32
    return %c0_i32, %c0_i32_0 : i32, i32
  }
  func.func @transform_2(%arg0: i32) -> (i32, i32) {
    %c0_i32 = arith.constant 0 : i32
    %c0_i32_0 = arith.constant 0 : i32
    %c0_i32_1 = arith.constant 0 : i32
    return %c0_i32, %c0_i32_0 : i32, i32
  }
  func.func @transform_3(%arg0: i32) -> (i32, i32) {
    %c0_i32 = arith.constant 0 : i32
    %c0_i32_0 = arith.constant 0 : i32
    %c0_i32_1 = arith.constant 0 : i32
    return %c0_i32, %c0_i32_0 : i32, i32
  }
  func.func @transform_4(%arg0: i32) -> (i32, i32) {
    %c0_i32 = arith.constant 0 : i32
    %c0_i32_0 = arith.constant 0 : i32
    %c0_i32_1 = arith.constant 0 : i32
    return %c0_i32, %c0_i32_0 : i32, i32
  }
  func.func @transform_5(%arg0: i32) -> (i32, i32) {
    %c0_i32 = arith.constant 0 : i32
    %c0_i32_0 = arith.constant 0 : i32
    return %arg0, %c0_i32 : i32, i32
  }
}

</mosaic_0001>

<bundles_post_ra>
// kernel: tpu_custom_call.1
= control target key start
LH: loop header
LB: loop body
LE: loop exit
PB: predicated region body
PF: predicated region fallthrough
CT: control target
= control target key end

     0   :  { %vm42_vm0 = vcmask 130048   ;;  %vm180_vm1 = vcmask 261120   ;;  %vm310_vm2 = vcmask 64512   ;;  %s669_s1 = inlined_call_operand.vmem [shape: f32[16,32], index: 1, kind: input, shape index: {}]   ;;  %s670_s0 = inlined_call_operand.vmem [shape: f32[128,16], index: 0, kind: input, shape index: {}]   ;;  %s671_s2 = inlined_call_operand.vmem [shape: f32[1,32], index: 2, kind: input, shape index: {}]   ;;  %s672_s3 = inlined_call_operand.vmem [shape: f32[32,8], index: 3, kind: input, shape index: {}]   ;;  %s673_s4 = inlined_call_operand.vmem [shape: f32[1,8], index: 4, kind: input, shape index: {}]   ;;  %s674_s5 = inlined_call_operand.vmem [shape: f32[128,8], index: 5, kind: output, shape index: {}]  }
   0x1   :  { %v37_v0 = vld [vmem:[%s669_s1 + $0x8] sm:$0xff]  ;;  %v36_v1 = vld [vmem:[%s669_s1] sm:$0xff]  ;;  %v22_v4 = vld [vmem:[%s670_s0 + $0x10] sm:$0xff] }
   0x2   :  { %105 = vmatpush.msra.mxu0 %v37_v0  ;;  %v20_v2 = vld [vmem:[%s670_s0] sm:$0xff]  ;;  %363 = vmatpush.msra.mxu3 %v37_v0  ;;  %v21_v3 = vld [vmem:[%s670_s0 + $0x8] sm:$0xff]  ;;  %v23_v5 = vld [vmem:[%s670_s0 + $0x18] sm:$0xff] }
   0x3   :  { %v24_v6 = vld [vmem:[%s670_s0 + $0x20] sm:$0xff]  ;;  %v29_v7 = vld [vmem:[%s670_s0 + $0x48] sm:$0xff]  ;;  %v30_v9 = vld [vmem:[%s670_s0 + $0x50] sm:$0xff] }
   0x4   :  { %106 = vmatpush.msra.mxu0 %v36_v1  ;;  %364 = vmatpush.msra.mxu3 %v36_v1  ;;  %v25_v8 = vld [vmem:[%s670_s0 + $0x28] sm:$0xff]  ;;  %v26_v10 = vld [vmem:[%s670_s0 + $0x30] sm:$0xff]  ;;  %v31_v11 = vld [vmem:[%s670_s0 + $0x58] sm:$0xff] }
   0x5   :  { %331 = vmatmul.msk.f32.vlgmr.msra.gmra.mxu0 %vm42_vm0, %v20_v2  ;;  %340 = vmatmul.msk.f32.vlgmr.msra.gmra.mxu3 %vm42_vm0, %v29_v7  ;;  %v27_v12 = vld [vmem:[%s670_s0 + $0x38] sm:$0xff]  ;;  %v32_v13 = vld [vmem:[%s670_s0 + $0x60] sm:$0xff]  ;;  %v33_v15 = vld [vmem:[%s670_s0 + $0x68] sm:$0xff] }
   0x6   :  { %v28_v14 = vld [vmem:[%s670_s0 + $0x40] sm:$0xff]  ;;  %v34_v16 = vld [vmem:[%s670_s0 + $0x70] sm:$0xff]  ;;  %v35_v17 = vld [vmem:[%s670_s0 + $0x78] sm:$0xff] }
   0x7   :  { %v175_v18 = vld [vmem:[%s672_s3 + $0x18] sm:$0xff]  ;;  %v174_v19 = vld [vmem:[%s672_s3 + $0x10] sm:$0xff]  ;;  %v173_v20 = vld [vmem:[%s672_s3 + $0x8] sm:$0xff] }
   0x8   :  { %241 = vmatpush.msra.mxu1 %v175_v18  ;;  %365 = vmatpush.msra.mxu2 %v175_v18  ;;  %v172_v21 = vld [vmem:[%s672_s3] sm:$0xff] }
   0x9   :  { %v550_v22 = vld [vmem:[%s671_s2] ss:$0 sm:$0xff] }
   0xa   :  { %242 = vmatpush.msra.mxu1 %v174_v19  ;;  %366 = vmatpush.msra.mxu2 %v174_v19  ;;  %v587_v7 = vld [vmem:[%s673_s4] ss:$0 sm:$0xff] }
   0xc   :  { %243 = vmatpush.msra.mxu1 %v173_v20  ;;  %367 = vmatpush.msra.mxu2 %v173_v20 }
   0xd   :  { %332 = vmatmul.msk.f32.gmra.mxu0 %vm42_vm0, %v21_v3  ;;  %341 = vmatmul.msk.f32.gmra.mxu3 %vm42_vm0, %v30_v9 }
   0xe   :  { %244 = vmatpush.msra.mxu1 %v172_v21  ;;  %368 = vmatpush.msra.mxu2 %v172_v21 }
  0x15   :  { %333 = vmatmul.msk.f32.gmra.mxu0 %vm42_vm0, %v22_v4  ;;  %342 = vmatmul.msk.f32.gmra.mxu3 %vm42_vm0, %v31_v11 }
  0x1d   :  { %334 = vmatmul.msk.f32.gmra.mxu0 %vm42_vm0, %v23_v5  ;;  %343 = vmatmul.msk.f32.gmra.mxu3 %vm42_vm0, %v32_v13 }
  0x25   :  { %335 = vmatmul.msk.f32.gmra.mxu0 %vm42_vm0, %v24_v6  ;;  %344 = vmatmul.msk.f32.gmra.mxu3 %vm42_vm0, %v33_v15 }
  0x2d   :  { %336 = vmatmul.msk.f32.gmra.mxu0 %vm42_vm0, %v25_v8  ;;  %345 = vmatmul.msk.f32.gmra.mxu3 %vm42_vm0, %v34_v16 }
  0x35   :  { %337 = vmatmul.msk.f32.gmra.mxu0 %vm42_vm0, %v26_v10  ;;  %346 = vmatmul.msk.f32.gmra.mxu3 %vm42_vm0, %v35_v17 }
  0x3d   :  { %338 = vmatmul.msk.f32.gmra.mxu0 %vm42_vm0, %v27_v12 }
  0x45   :  { %339 = vmatmul.msk.f32.gmra.mxu0 %vm42_vm0, %v28_v14 }
  0x82   :  { %v108_v23 = vpop.f32.mrf.mxu0 }
  0x83   :  { %v109_v24 = vadd.f32 %v550_v22, %v108_v23 }
  0x85   :  { %371 = vtanh.f32 %v109_v24 }
  0x88   :  { %v135_v43 = vpop.f32.mrf.mxu3 }
  0x89   :  { %v136_v51 = vadd.f32 %v550_v22, %v135_v43 }
  0x8a   :  { %v111_v25 = vpop.f32.mrf.mxu0 }
  0x8b   :  { %v372_v26 = vpop.eup %371  ;;  %v112_v27 = vadd.f32 %v550_v22, %v111_v25 }
  0x8c   :  { %347 = vmatmul.msk.f32.vlgmr.msra.gmra.mxu1 %vm180_vm1, %v372_v26 }
  0x8d   :  { %373 = vtanh.f32 %v112_v27 }
  0x90   :  { %v138_v48 = vpop.f32.mrf.mxu3 }
  0x91   :  { %v139_v54 = vadd.f32 %v550_v22, %v138_v48 }
  0x92   :  { %v114_v28 = vpop.f32.mrf.mxu0 }
  0x93   :  { %v374_v29 = vpop.eup %373  ;;  %v115_v30 = vadd.f32 %v550_v22, %v114_v28 }
  0x94   :  { %348 = vmatmul.msk.f32.gmra.mxu1 %vm180_vm1, %v374_v29 }
  0x95   :  { %375 = vtanh.f32 %v115_v30 }
  0x98   :  { %v141_v53 = vpop.f32.mrf.mxu3 }
  0x99   :  { %v142_v57 = vadd.f32 %v550_v22, %v141_v53 }
  0x9a   :  { %v117_v31 = vpop.f32.mrf.mxu0 }
  0x9b   :  { %v376_v32 = vpop.eup %375  ;;  %v118_v33 = vadd.f32 %v550_v22, %v117_v31 }
  0x9c   :  { %349 = vmatmul.msk.f32.gmra.mxu1 %vm180_vm1, %v376_v32 }
  0x9d   :  { %377 = vtanh.f32 %v118_v33 }
  0xa0   :  { %v144_v56 = vpop.f32.mrf.mxu3 }
  0xa1   :  { %v145_v59 = vadd.f32 %v550_v22, %v144_v56 }
  0xa2   :  { %v120_v34 = vpop.f32.mrf.mxu0 }
  0xa3   :  { %v378_v35 = vpop.eup %377  ;;  %v121_v36 = vadd.f32 %v550_v22, %v120_v34 }
  0xa4   :  { %350 = vmatmul.msk.f32.gmra.mxu1 %vm180_vm1, %v378_v35 }
  0xa5   :  { %379 = vtanh.f32 %v121_v36 }
  0xa8   :  { %v147_v60 = vpop.f32.mrf.mxu3 }
  0xa9   :  { %v148_v62 = vadd.f32 %v550_v22, %v147_v60 }
  0xaa   :  { %v123_v37 = vpop.f32.mrf.mxu0 }
  0xab   :  { %v380_v38 = vpop.eup %379  ;;  %v124_v39 = vadd.f32 %v550_v22, %v123_v37 }
  0xac   :  { %351 = vmatmul.msk.f32.gmra.mxu1 %vm180_vm1, %v380_v38 }
  0xad   :  { %381 = vtanh.f32 %v124_v39 }
  0xb0   :  { %v150_v0 = vpop.f32.mrf.mxu3 }
  0xb1   :  { %v151_v1 = vadd.f32 %v550_v22, %v150_v0 }
  0xb2   :  { %v126_v40 = vpop.f32.mrf.mxu0 }
  0xb3   :  { %v382_v41 = vpop.eup %381  ;;  %v127_v42 = vadd.f32 %v550_v22, %v126_v40 }
  0xb4   :  { %352 = vmatmul.msk.f32.gmra.mxu1 %vm180_vm1, %v382_v41 }
  0xb5   :  { %383 = vtanh.f32 %v127_v42 }
  0xb8   :  { %v153_v3 = vpop.f32.mrf.mxu3 }
  0xb9   :  { %v154_v4 = vadd.f32 %v550_v22, %v153_v3 }
  0xba   :  { %v129_v44 = vpop.f32.mrf.mxu0 }
  0xbb   :  { %v384_v45 = vpop.eup %383  ;;  %v130_v46 = vadd.f32 %v550_v22, %v129_v44 }
  0xbc   :  { %353 = vmatmul.msk.f32.gmra.mxu1 %vm180_vm1, %v384_v45 }
  0xbd   :  { %385 = vtanh.f32 %v130_v46 }
  0xc2   :  { %v132_v47 = vpop.f32.mrf.mxu0 }
  0xc3   :  { %v386_v49 = vpop.eup %385  ;;  %v133_v50 = vadd.f32 %v550_v22, %v132_v47 }
  0xc4   :  { %354 = vmatmul.msk.f32.gmra.mxu1 %vm180_vm1, %v386_v49 }
  0xc5   :  { %387 = vtanh.f32 %v133_v50 }
  0xc6   :  { %389 = vtanh.f32 %v136_v51 }
  0xc7   :  { %391 = vtanh.f32 %v139_v54 }
  0xc8   :  { %393 = vtanh.f32 %v142_v57 }
  0xc9   :  { %395 = vtanh.f32 %v145_v59 }
  0xca   :  { %397 = vtanh.f32 %v148_v62 }
  0xcb   :  { %v388_v52 = vpop.eup %387  ;;  %399 = vtanh.f32 %v151_v1 }
  0xcc   :  { %355 = vmatmul.msk.f32.vlgmr.msra.gmra.mxu2 %vm180_vm1, %v388_v52  ;;  %v390_v55 = vpop.eup %389  ;;  %401 = vtanh.f32 %v154_v4 }
  0xcd   :  { %v392_v58 = vpop.eup %391 }
  0xce   :  { %v394_v61 = vpop.eup %393 }
  0xcf   :  { %v396_v63 = vpop.eup %395 }
  0xd0   :  { %v398_v2 = vpop.eup %397 }
  0xd1   :  { %v400_v5 = vpop.eup %399 }
  0xd2   :  { %v402_v6 = vpop.eup %401 }
  0xd4   :  { %356 = vmatmul.msk.f32.gmra.mxu2 %vm180_vm1, %v390_v55 }
  0xdc   :  { %357 = vmatmul.msk.f32.gmra.mxu2 %vm180_vm1, %v392_v58 }
  0xe4   :  { %358 = vmatmul.msk.f32.gmra.mxu2 %vm180_vm1, %v394_v61 }
  0xec   :  { %359 = vmatmul.msk.f32.gmra.mxu2 %vm180_vm1, %v396_v63 }
  0xf4   :  { %360 = vmatmul.msk.f32.gmra.mxu2 %vm180_vm1, %v398_v2 }
  0xfc   :  { %361 = vmatmul.msk.f32.gmra.mxu2 %vm180_vm1, %v400_v5 }
 0x104   :  { %362 = vmatmul.msk.f32.gmra.mxu2 %vm180_vm1, %v402_v6 }
 0x109   :  { %v246_v8 = vpop.f32.mrf.mxu1 }
 0x10a   :  { %v247_v9 = vadd.f32 %v587_v7, %v246_v8 }
 0x10c   :  { %403 = vtanh.f32 %v247_v9 }
 0x111   :  { %v249_v10 = vpop.f32.mrf.mxu1 }
 0x112   :  { %v404_v11 = vpop.eup %403  ;;  %v250_v12 = vadd.f32 %v587_v7, %v249_v10 }
 0x113   :  { %311 = vst.msk [vmem:[%s674_s5] sm:$0xff] %vm310_vm2, %v404_v11 }
 0x114   :  { %405 = vtanh.f32 %v250_v12 }
 0x119   :  { %v252_v13 = vpop.f32.mrf.mxu1 }
 0x11a   :  { %v406_v14 = vpop.eup %405  ;;  %v253_v15 = vadd.f32 %v587_v7, %v252_v13 }
 0x11b   :  { %312 = vst.msk [vmem:[%s674_s5 + $0x8] sm:$0xff] %vm310_vm2, %v406_v14 }
 0x11c   :  { %407 = vtanh.f32 %v253_v15 }
 0x121   :  { %v255_v16 = vpop.f32.mrf.mxu1 }
 0x122   :  { %v408_v17 = vpop.eup %407  ;;  %v256_v18 = vadd.f32 %v587_v7, %v255_v16 }
 0x123   :  { %313 = vst.msk [vmem:[%s674_s5 + $0x10] sm:$0xff] %vm310_vm2, %v408_v17 }
 0x124   :  { %409 = vtanh.f32 %v256_v18 }
 0x129   :  { %v258_v19 = vpop.f32.mrf.mxu1 }
 0x12a   :  { %v410_v20 = vpop.eup %409  ;;  %v259_v21 = vadd.f32 %v587_v7, %v258_v19 }
 0x12b   :  { %314 = vst.msk [vmem:[%s674_s5 + $0x18] sm:$0xff] %vm310_vm2, %v410_v20 }
 0x12c   :  { %411 = vtanh.f32 %v259_v21 }
 0x131   :  { %v261_v22 = vpop.f32.mrf.mxu1 }
 0x132   :  { %v412_v23 = vpop.eup %411  ;;  %v262_v24 = vadd.f32 %v587_v7, %v261_v22 }
 0x133   :  { %315 = vst.msk [vmem:[%s674_s5 + $0x20] sm:$0xff] %vm310_vm2, %v412_v23 }
 0x134   :  { %413 = vtanh.f32 %v262_v24 }
 0x139   :  { %v264_v25 = vpop.f32.mrf.mxu1 }
 0x13a   :  { %v414_v26 = vpop.eup %413  ;;  %v265_v27 = vadd.f32 %v587_v7, %v264_v25 }
 0x13b   :  { %316 = vst.msk [vmem:[%s674_s5 + $0x28] sm:$0xff] %vm310_vm2, %v414_v26 }
 0x13c   :  { %415 = vtanh.f32 %v265_v27 }
 0x141   :  { %v267_v28 = vpop.f32.mrf.mxu1 }
 0x142   :  { %v416_v29 = vpop.eup %415  ;;  %v268_v30 = vadd.f32 %v587_v7, %v267_v28 }
 0x143   :  { %317 = vst.msk [vmem:[%s674_s5 + $0x30] sm:$0xff] %vm310_vm2, %v416_v29 }
 0x144   :  { %417 = vtanh.f32 %v268_v30 }
 0x14a   :  { %v418_v31 = vpop.eup %417 }
 0x14b   :  { %318 = vst.msk [vmem:[%s674_s5 + $0x38] sm:$0xff] %vm310_vm2, %v418_v31 }
 0x14f   :  { %v270_v32 = vpop.f32.mrf.mxu2 }
 0x150   :  { %v271_v33 = vadd.f32 %v587_v7, %v270_v32 }
 0x152   :  { %419 = vtanh.f32 %v271_v33 }
 0x157   :  { %v273_v34 = vpop.f32.mrf.mxu2 }
 0x158   :  { %v420_v35 = vpop.eup %419  ;;  %v274_v36 = vadd.f32 %v587_v7, %v273_v34 }
 0x159   :  { %319 = vst.msk [vmem:[%s674_s5 + $0x40] sm:$0xff] %vm310_vm2, %v420_v35 }
 0x15a   :  { %421 = vtanh.f32 %v274_v36 }
 0x15f   :  { %v276_v37 = vpop.f32.mrf.mxu2 }
 0x160   :  { %v422_v38 = vpop.eup %421  ;;  %v277_v39 = vadd.f32 %v587_v7, %v276_v37 }
 0x161   :  { %320 = vst.msk [vmem:[%s674_s5 + $0x48] sm:$0xff] %vm310_vm2, %v422_v38 }
 0x162   :  { %423 = vtanh.f32 %v277_v39 }
 0x167   :  { %v279_v40 = vpop.f32.mrf.mxu2 }
 0x168   :  { %v424_v41 = vpop.eup %423  ;;  %v280_v42 = vadd.f32 %v587_v7, %v279_v40 }
 0x169   :  { %321 = vst.msk [vmem:[%s674_s5 + $0x50] sm:$0xff] %vm310_vm2, %v424_v41 }
 0x16a   :  { %425 = vtanh.f32 %v280_v42 }
 0x16f   :  { %v282_v43 = vpop.f32.mrf.mxu2 }
 0x170   :  { %v426_v44 = vpop.eup %425  ;;  %v283_v45 = vadd.f32 %v587_v7, %v282_v43 }
 0x171   :  { %322 = vst.msk [vmem:[%s674_s5 + $0x58] sm:$0xff] %vm310_vm2, %v426_v44 }
 0x172   :  { %427 = vtanh.f32 %v283_v45 }
 0x177   :  { %v285_v46 = vpop.f32.mrf.mxu2 }
 0x178   :  { %v428_v47 = vpop.eup %427  ;;  %v286_v48 = vadd.f32 %v587_v7, %v285_v46 }
 0x179   :  { %323 = vst.msk [vmem:[%s674_s5 + $0x60] sm:$0xff] %vm310_vm2, %v428_v47 }
 0x17a   :  { %429 = vtanh.f32 %v286_v48 }
 0x17f   :  { %v288_v49 = vpop.f32.mrf.mxu2 }
 0x180   :  { %v430_v50 = vpop.eup %429  ;;  %v289_v51 = vadd.f32 %v587_v7, %v288_v49 }
 0x181   :  { %324 = vst.msk [vmem:[%s674_s5 + $0x68] sm:$0xff] %vm310_vm2, %v430_v50 }
 0x182   :  { %431 = vtanh.f32 %v289_v51 }
 0x187   :  { %v291_v52 = vpop.f32.mrf.mxu2 }
 0x188   :  { %v432_v53 = vpop.eup %431  ;;  %v292_v54 = vadd.f32 %v587_v7, %v291_v52 }
 0x189   :  { %325 = vst.msk [vmem:[%s674_s5 + $0x70] sm:$0xff] %vm310_vm2, %v432_v53 }
 0x18a   :  { %433 = vtanh.f32 %v292_v54 }
 0x190   :  { %v434_v55 = vpop.eup %433 }
 0x191   :  { %326 = vst.msk [vmem:[%s674_s5 + $0x78] sm:$0xff] %vm310_vm2, %v434_v55 }

</bundles_post_ra>
